<compile_context>
chip_gen: v6e
topology: v6e:2x2x1
jax: 0.10.0
libtpu: 0.0.40
codegen_flags: <defaults>
</compile_context>

<pallas_src>
import jax
import jax.numpy as jnp
from jax.experimental import pallas as pl
from jax.experimental.pallas import tpu as pltpu


# --------------------------------------------------------------------------- kernels
def _disc_cond_kernel(x_ref, t_ref, y_ref, b_ref, o_ref, acc_ref):
    """Conditional head: out[b] = x[b]·w + x[b]·emb[y[b]] + bias.

    t_ref is one (TF, n_cols) tile of the augmented table [w ; emb].T (zero padded
    to a 128-lane multiple).  acc_ref accumulates P = x @ T in f32 across the F
    grid axis; the per-row column select runs once, at the last F step.
    """
    k = pl.program_id(1)

    @pl.when(k == 0)
    def _init():
        acc_ref[...] = jnp.zeros_like(acc_ref)

    # MXU contraction over this F tile; x stays in its native dtype (bf16/f32).
    acc_ref[...] += jnp.dot(x_ref[...], t_ref[...],
                            preferred_element_type=jnp.float32)       # (TB, n_cols)

    @pl.when(k == pl.num_programs(1) - 1)
    def _finalize():
        tb, n_cols = acc_ref.shape
        idx = y_ref[...]                                              # (TB, 1) int32
        cols = jax.lax.broadcasted_iota(jnp.int32, (tb, n_cols), 1)
        sel = jnp.logical_or(cols == 0, cols == idx + 1).astype(jnp.float32)
        s = jnp.sum(acc_ref[...] * sel, axis=1, keepdims=True)        # reduce over n_cols only
        o_ref[...] = (s + b_ref[0, 0]).astype(o_ref.dtype)


def _disc_uncond_kernel(x_ref, t_ref, b_ref, o_ref, acc_ref):
    """Unconditional head: out[b] = x[b]·w + bias (w lives in column 0 of t_ref)."""
    k = pl.program_id(1)

    @pl.when(k == 0)
    def _init():
        acc_ref[...] = jnp.zeros_like(acc_ref)

    acc_ref[...] += jnp.dot(x_ref[...], t_ref[...],
                            preferred_element_type=jnp.float32)       # (TB, 128)

    @pl.when(k == pl.num_programs(1) - 1)
    def _finalize():
        o_ref[...] = (acc_ref[:, 0:1] + b_ref[0, 0]).astype(o_ref.dtype)


# --------------------------------------------------------------------------- tiling
_SUBLANE_MIN = {4: 8, 2: 16, 1: 32}   # minimum sublane tile per element size
_LANE = 128


def _cdiv(a, b):
    return -(-a // b)


def _round_up(v, m):
    return _cdiv(v, m) * m


def _chip_budget():
    """(streaming budget, vmem_limit_bytes, batch-tile cap) per TPU generation."""
    try:
        cap = int(getattr(pltpu.get_tpu_info(), "vmem_capacity_bytes", 0) or 0)
    except Exception:
        cap = 0
    if cap >= (96 << 20):                 # v5e / v6e: 128 MiB VMEM -> long DMAs
        return 60 << 20, 96 << 20, 4096
    # v7x (64 MiB per TensorCore) or unknown: stay conservative.
    return 26 << 20, 56 << 20, 2048


def _pick_tiles(batch, n_features, n_cols, x_itemsize, out_itemsize,
                tile_override=None, f_tile_override=None):
    """Pick (batch_tile, f_tile, vmem_limit) under an honest per-step VMEM model."""
    budget, vmem_limit, tb_cap = _chip_budget()
    sub = _SUBLANE_MIN.get(x_itemsize, 8)

    def rows_for(tf):
        # x / y / out streams are double-buffered by the pipeline; the (TB, n_cols)
        # accumulator, the dot result and the select mask are f32.
        per_row = 2 * tf * x_itemsize + 2 * 4 + 2 * out_itemsize + 3 * n_cols * 4
        avail = budget - 2 * tf * n_cols * x_itemsize     # table tile (double-buffered)
        return max(avail, 0) // per_row

    # ---- F (reduction) tile --------------------------------------------------
    if f_tile_override is not None:
        tf = min(n_features, max(_LANE, (int(f_tile_override) // _LANE) * _LANE))
        if n_features % tf:
            tf = n_features                # only tile F when the tiles divide exactly
    else:
        tf = n_features
        if rows_for(tf) < 128 and n_features % _LANE == 0:
            # Full-F batch tiles would be tiny: add an F reduction axis instead.
            divs = [d for d in range(_LANE, n_features, _LANE) if n_features % d == 0]
            good = [d for d in divs if rows_for(d) >= 512]
            if good:
                tf = max(good)
            elif divs:
                tf = max(divs, key=rows_for)

    # ---- batch (parallel) tile -----------------------------------------------
    if tile_override is not None:
        tb = max(sub, (int(tile_override) // sub) * sub)   # dtype-aware sublane floor
    else:
        tb = min(rows_for(tf), tb_cap)
        if batch > 256:
            # Keep >= 2 "parallel" batch steps so v7x's two TensorCores both get work.
            tb = min(tb, _round_up(_cdiv(batch, 2), _LANE))
        tb = max(128, (tb // 128) * 128)   # budget << vmem_limit keeps this floor safe
    if batch <= tb:
        tb = batch                         # single full-extent batch block
    return tb, tf, vmem_limit


# --------------------------------------------------------------------------- wrapper
def linear_discriminator(x, weight, bias, emb_table=None, y=None, *,
                         tile_override=None, f_tile_override=None):
    """x: (B, F); weight: (1, F); bias: (1, 1); emb_table: (C, F); y: (B,) int."""
    batch, n_features = x.shape
    out_dtype = x.dtype
    conditional = (y is not None) and (emb_table is not None)
    n_classes = emb_table.shape[0] if conditional else 0
    # Lane-pad the class axis of the augmented table to a 128 multiple: keeps the
    # MXU output and the select mask lane-dense and avoids narrow-N matmul layouts.
    n_cols = _round_up(n_classes + 1, _LANE)

    tb, tf, vmem_limit = _pick_tiles(
        batch, n_features, n_cols,
        jnp.dtype(x.dtype).itemsize, jnp.dtype(out_dtype).itemsize,
        tile_override, f_tile_override)
    grid = (_cdiv(batch, tb), _cdiv(n_features, tf))

    bias_smem = jnp.asarray(bias, jnp.float32).reshape(1, 1)

    x_spec = pl.BlockSpec((tb, tf), lambda i, k: (i, k))
    t_spec = pl.BlockSpec((tf, n_cols), lambda i, k: (k, 0))     # resident when F untiled
    b_spec = pl.BlockSpec(memory_space=pltpu.MemorySpace.SMEM)   # scalar bias in SMEM
    out_spec = pl.BlockSpec((tb, 1), lambda i, k: (i, 0))        # resident across F axis
    cparams = pltpu.CompilerParams(
        dimension_semantics=("parallel", "arbitrary"),  # batch: megacore split; F: reduction
        vmem_limit_bytes=vmem_limit,
    )
    # NOTE: the table operand could be single-buffered (pipeline_mode=pl.Buffered(1))
    # when F is untiled since its index_map is constant; the VMEM budget above already
    # charges the default double buffer instead, so correctness does not depend on it.

    # Augmented class table, pre-transposed to (F, n_cols):
    #   column 0           -> Linear weight row w
    #   columns 1 .. C     -> Embedding rows emb[c]
    #   columns C+1 .. pad -> zeros (lane padding)
    w_row = weight.reshape(1, n_features)
    if conditional:
        table = jnp.concatenate([w_row, emb_table.reshape(n_classes, n_features)], axis=0)
    else:
        table = w_row
    table_t = jnp.pad(table, ((0, n_cols - table.shape[0]), (0, 0))).T.astype(x.dtype)

    if conditional:
        y2d = y.astype(jnp.int32).reshape(batch, 1)
        y_spec = pl.BlockSpec((tb, 1), lambda i, k: (i, 0))
        return pl.pallas_call(
            _disc_cond_kernel,
            out_shape=jax.ShapeDtypeStruct((batch, 1), out_dtype),
            grid=grid,
            in_specs=[x_spec, t_spec, y_spec, b_spec],
            out_specs=out_spec,
            scratch_shapes=[pltpu.VMEM((tb, n_cols), jnp.float32)],
            compiler_params=cparams,
        )(x, table_t, y2d, bias_smem)
    return pl.pallas_call(
        _disc_uncond_kernel,
        out_shape=jax.ShapeDtypeStruct((batch, 1), out_dtype),
        grid=grid,
        in_specs=[x_spec, t_spec, b_spec],
        out_specs=out_spec,
        scratch_shapes=[pltpu.VMEM((tb, n_cols), jnp.float32)],
        compiler_params=cparams,
    )(x, table_t, bias_smem)


# --------------------------------------------------------------------------- reference
def _reference(x, weight, bias, emb_table=None, y=None):
    # Elementwise multiply + f32 sum (precision-robust reference, matches PyTorch math).
    d = jnp.sum(x * weight.reshape(1, -1), axis=1, keepdims=True) + jnp.reshape(bias, (1, 1))
    if y is not None:
        d = d + jnp.sum(x * emb_table[y], axis=1, keepdims=True)
    return d


if __name__ == "__main__":
    key = jax.random.PRNGKey(0)
    (kw, kb, ke, kx1, ky1, kx2, ky2,
     kw3, kb3, ke3, kx3, ky3) = jax.random.split(key, 12)

    def snap(a):  # keep test data bf16-representable so any MXU precision mode is exact
        return a.astype(jnp.bfloat16).astype(jnp.float32)

    # --- Case 1: F=32, C=4, tiny batch -> single full-extent block, cond + uncond ----
    F1, C1, B1 = 32, 4, 8
    bound = 1.0 / (F1 ** 0.5)
    w1 = snap(jax.random.uniform(kw, (1, F1), jnp.float32, -bound, bound))
    b1 = snap(jax.random.uniform(kb, (1, 1), jnp.float32, -bound, bound))
    e1 = snap(jax.random.normal(ke, (C1, F1), jnp.float32))
    x1 = snap(jax.random.normal(kx1, (B1, F1), jnp.float32))
    y1 = jax.random.randint(ky1, (B1,), 0, C1)

    out1_c = jax.block_until_ready(linear_discriminator(x1, w1, b1, e1, y1))
    out1_u = jax.block_until_ready(linear_discriminator(x1, w1, b1))
    assert out1_c.shape == (B1, 1) and out1_u.shape == (B1, 1)
    assert jnp.allclose(out1_c, _reference(x1, w1, b1, e1, y1), atol=1e-4, rtol=1e-4)
    assert jnp.allclose(out1_u, _reference(x1, w1, b1), atol=1e-4, rtol=1e-4)

    # --- Case 2: multi-tile batch grid with a partial (unpadded) tail block ----------
    B2 = 200
    x2 = snap(jax.random.normal(kx2, (B2, F1), jnp.float32))
    y2 = jax.random.randint(ky2, (B2,), 0, C1)
    out2_c = jax.block_until_ready(
        linear_discriminator(x2, w1, b1, e1, y2, tile_override=64))
    out2_u = jax.block_until_ready(linear_discriminator(x2, w1, b1, tile_override=64))
    assert out2_c.shape == (B2, 1) and out2_u.shape == (B2, 1)
    assert jnp.allclose(out2_c, _reference(x2, w1, b1, e1, y2), atol=1e-4, rtol=1e-4)
    assert jnp.allclose(out2_u, _reference(x2, w1, b1), atol=1e-4, rtol=1e-4)

    # --- Case 3: F-tiled accumulator path (F=256, f_tile=128) + partial batch tail ---
    F3, C3, B3 = 256, 4, 20
    bound3 = 1.0 / (F3 ** 0.5)
    w3 = snap(jax.random.uniform(kw3, (1, F3), jnp.float32, -bound3, bound3))
    b3 = snap(jax.random.uniform(kb3, (1, 1), jnp.float32, -bound3, bound3))
    e3 = snap(jax.random.normal(ke3, (C3, F3), jnp.float32))
    x3 = snap(jax.random.normal(kx3, (B3, F3), jnp.float32))
    y3 = jax.random.randint(ky3, (B3,), 0, C3)
    out3_c = jax.block_until_ready(
        linear_discriminator(x3, w3, b3, e3, y3, tile_override=8, f_tile_override=128))
    out3_u = jax.block_until_ready(
        linear_discriminator(x3, w3, b3, tile_override=8, f_tile_override=128))
    assert out3_c.shape == (B3, 1) and out3_u.shape == (B3, 1)
    assert jnp.allclose(out3_c, _reference(x3, w3, b3, e3, y3), atol=1e-4, rtol=1e-4)
    assert jnp.allclose(out3_u, _reference(x3, w3, b3), atol=1e-4, rtol=1e-4)

    print("KERNEL_OK")
</pallas_src>

<mosaic_0001>
module attributes {stable_mosaic.version = 11 : i64} {
  func.func @_disc_cond_kernel(%arg0: i32, %arg1: i32, %arg2: memref<8x32xf32, #tpu.memory_space<vmem>>, %arg3: memref<32x128xf32, #tpu.memory_space<vmem>>, %arg4: memref<8x1xi32, #tpu.memory_space<vmem>>, %arg5: memref<1x1xf32, #tpu.memory_space<smem>>, %arg6: memref<8x1xf32, #tpu.memory_space<vmem>>, %arg7: memref<8x128xf32, #tpu.memory_space<vmem>>) attributes {dimension_semantics = [#tpu.dimension_semantics<parallel>, #tpu.dimension_semantics<arbitrary>], iteration_bounds = array<i64: 1, 1>, scalar_prefetch = 0 : i64, scratch_operands = 1 : i64, tpu.core_type = #tpu.core_type<tc>, window_params = [{transform_indices = @transform_0, window_bounds = array<i64: 8, 32>}, {transform_indices = @transform_1, window_bounds = array<i64: 32, 128>}, {transform_indices = @transform_2, window_bounds = array<i64: 8, 1>}, {transform_indices = @transform_3, window_bounds = array<i64: 1, 1>}, {transform_indices = @transform_4, window_bounds = array<i64: 8, 1>}]} {
    %c0_i32 = arith.constant 0 : i32
    %0 = arith.cmpi eq, %arg1, %c0_i32 : i32
    %1 = arith.extui %0 : i1 to i32
    %c0_i32_0 = arith.constant 0 : i32
    %2 = arith.cmpi ne, %1, %c0_i32_0 : i32
    scf.if %2 {
      %cst_10 = arith.constant 0.000000e+00 : f32
      %12 = vector.broadcast %cst_10 : f32 to vector<8x128xf32>
      %c0_11 = arith.constant 0 : index
      %c0_12 = arith.constant 0 : index
      %13 = vector.load %arg7[%c0_11, %c0_12] : memref<8x128xf32, #tpu.memory_space<vmem>>, vector<8x128xf32>
      tpu.vector_store %arg7[%c0_11, %c0_12], %12 {strides = array<i32>} : memref<8x128xf32, #tpu.memory_space<vmem>>, vector<8x128xf32>,
    } else {
    }
    %c0 = arith.constant 0 : index
    %c0_1 = arith.constant 0 : index
    %3 = vector.load %arg7[%c0, %c0_1] : memref<8x128xf32, #tpu.memory_space<vmem>>, vector<8x128xf32>
    %c0_2 = arith.constant 0 : index
    %c0_3 = arith.constant 0 : index
    %4 = vector.load %arg2[%c0_2, %c0_3] : memref<8x32xf32, #tpu.memory_space<vmem>>, vector<8x32xf32>
    %c0_4 = arith.constant 0 : index
    %c0_5 = arith.constant 0 : index
    %5 = vector.load %arg3[%c0_4, %c0_5] : memref<32x128xf32, #tpu.memory_space<vmem>>, vector<32x128xf32>
    %cst = arith.constant dense<0.000000e+00> : vector<8x128xf32>
    %6 = tpu.matmul %4, %5, %cst {dimension_numbers = #tpu.dot_dimension_numbers<[1], [0], [0], [1], [0, 0, 1, 1], [], []>} : vector<8x32xf32>, vector<32x128xf32>, vector<8x128xf32> -> vector<8x128xf32>
    %7 = arith.addf %3, %6 : vector<8x128xf32>
    %c0_6 = arith.constant 0 : index
    %c0_7 = arith.constant 0 : index
    %8 = vector.load %arg7[%c0_6, %c0_7] : memref<8x128xf32, #tpu.memory_space<vmem>>, vector<8x128xf32>
    tpu.vector_store %arg7[%c0_6, %c0_7], %7 {strides = array<i32>} : memref<8x128xf32, #tpu.memory_space<vmem>>, vector<8x128xf32>,
    %c0_i32_8 = arith.constant 0 : i32
    %9 = arith.cmpi eq, %arg1, %c0_i32_8 : i32
    %10 = arith.extui %9 : i1 to i32
    %c0_i32_9 = arith.constant 0 : i32
    %11 = arith.cmpi ne, %10, %c0_i32_9 : i32
    scf.if %11 {
      %c0_10 = arith.constant 0 : index
      %c0_11 = arith.constant 0 : index
      %12 = vector.load %arg4[%c0_10, %c0_11] : memref<8x1xi32, #tpu.memory_space<vmem>>, vector<8x1xi32>
      %13 = tpu.iota {dimensions = array<i32: 1>} : vector<8x128xi32>
      %c0_i32_12 = arith.constant 0 : i32
      %14 = vector.broadcast %c0_i32_12 : i32 to vector<8x128xi32>
      %15 = arith.cmpi eq, %13, %14 : vector<8x128xi32>
      %c1_i32 = arith.constant 1 : i32
      %16 = vector.broadcast %c1_i32 : i32 to vector<8x1xi32>
      %17 = arith.addi %12, %16 : vector<8x1xi32>
      %18 = vector.broadcast %17 : vector<8x1xi32> to vector<8x128xi32>
      %19 = arith.cmpi eq, %13, %18 : vector<8x128xi32>
      %20 = arith.ori %15, %19 : vector<8x128xi1>
      %21 = arith.extui %20 : vector<8x128xi1> to vector<8x128xi32>
      %22 = arith.sitofp %21 : vector<8x128xi32> to vector<8x128xf32>
      %c0_13 = arith.constant 0 : index
      %c0_14 = arith.constant 0 : index
      %23 = vector.load %arg7[%c0_13, %c0_14] : memref<8x128xf32, #tpu.memory_space<vmem>>, vector<8x128xf32>
      %24 = arith.mulf %23, %22 : vector<8x128xf32>
      %cst_15 = arith.constant dense<0.000000e+00> : vector<8xf32>
      %25 = vector.multi_reduction <add>, %24, %cst_15 [1] : vector<8x128xf32> to vector<8xf32>
      %26 = vector.shape_cast %25 : vector<8xf32> to vector<8x1xf32>
      %c0_16 = arith.constant 0 : index
      %c0_17 = arith.constant 0 : index
      %27 = memref.load %arg5[%c0_16, %c0_17] : memref<1x1xf32, #tpu.memory_space<smem>>
      %28 = vector.broadcast %27 : f32 to vector<8x1xf32>
      %29 = arith.addf %26, %28 : vector<8x1xf32>
      %c0_18 = arith.constant 0 : index
      %c0_19 = arith.constant 0 : index
      %30 = vector.load %arg6[%c0_18, %c0_19] : memref<8x1xf32, #tpu.memory_space<vmem>>, vector<8x1xf32>
      tpu.vector_store %arg6[%c0_18, %c0_19], %29 {strides = array<i32>} : memref<8x1xf32, #tpu.memory_space<vmem>>, vector<8x1xf32>,
    } else {
    }
    return
  }
  func.func @transform_0(%arg0: i32, %arg1: i32) -> (i32, i32) {
    %c0_i32 = arith.constant 0 : i32
    return %arg0, %arg1 : i32, i32
  }
  func.func @transform_1(%arg0: i32, %arg1: i32) -> (i32, i32) {
    %c0_i32 = arith.constant 0 : i32
    %c0_i32_0 = arith.constant 0 : i32
    return %arg1, %c0_i32 : i32, i32
  }
  func.func @transform_2(%arg0: i32, %arg1: i32) -> (i32, i32) {
    %c0_i32 = arith.constant 0 : i32
    %c0_i32_0 = arith.constant 0 : i32
    return %arg0, %c0_i32 : i32, i32
  }
  func.func @transform_3(%arg0: i32, %arg1: i32) -> (i32, i32) {
    %c0_i32 = arith.constant 0 : i32
    %c0_i32_0 = arith.constant 0 : i32
    %c0_i32_1 = arith.constant 0 : i32
    return %c0_i32, %c0_i32_0 : i32, i32
  }
  func.func @transform_4(%arg0: i32, %arg1: i32) -> (i32, i32) {
    %c0_i32 = arith.constant 0 : i32
    %c0_i32_0 = arith.constant 0 : i32
    return %arg0, %c0_i32 : i32, i32
  }
}

</mosaic_0001>

<bundles_post_ra>
// kernel: tpu_custom_call.1
= control target key start
LH: loop header
LB: loop body
LE: loop exit
PB: predicated region body
PF: predicated region fallthrough
CT: control target
= control target key end

     0   :  { %10 = vsyncpa [#allocation5], 0  ;;  %s195_s15 = smov [#allocation4]   ;;  %s241_s0 = inlined_call_operand.vmem [shape: f32[8,32], index: 0, kind: input, shape index: {}]   ;;  %s242_s1 = inlined_call_operand.hbm [shape: f32[32,128], index: 1, kind: input, shape index: {}]   ;;  %s243_s2 = inlined_call_operand.vmem [shape: s32[8,1], index: 2, kind: input, shape index: {}]   ;;  %s244_s3 = inlined_call_operand.<no memory space> [shape: f32[1,1], index: 3, kind: input, shape index: {}]   ;;  %s245_s4 = inlined_call_operand.vmem [shape: f32[8,1], index: 4, kind: output, shape index: {}]  }
   0x1   :  { %s18_s16 = sshll.u32 %s195_s15, 4  ;;  %s19_s16 = int_to_ptr.vmem [resolvable:$true] %s18_s16 }
   0x2   :  { %s181_s17 = scalar_lea.vmem %s19_s16, 512  ;;  %p186_p1 = scmp.lt.s32.totalorder %s19_s16, %s19_s16 }
   0x3   :  { %p182_p0 = scmp.ne.s32.totalorder %s19_s16, %s181_s17  ;;  %p187_p2 = scmp.lt.s32.totalorder %s181_s17, %s181_s17 }
   0x5   :  { %p188_p3 = por %p187_p2, %p186_p1 }
   0x7   :  { %p189_p4 = pnand %p188_p3, %p182_p0 }
   0x9   :  { %192 = shalt.err (!%p189_p4)
}
   0xa   :  { %s196_s18 = smov 128   ;;  %s197_s19 = smov 8  }
   0xb   :  { %24 = dma.hbm_to_vmem [thread:$0]  %s242_s1, 512, %s19_s16, [#allocation5], %s196_s18, %s196_s18, %s197_s19  }
   0xc   :  { %193 = dma.done.wait [#allocation5], 512  }
   0xd   :  { %194 = vsyncadd [#allocation5], 4294966784  ;;  %v198_v0 = vmov 0.0   ;;  %vm199_vm0 = vmmov 0   ;;  %v200_v1 = vmov 0   ;;  %v42_v2 = vld [vmem:[#allocation4 + $0x18] sm:$0xff]  ;;  %v123_v9 = vlaneseq }
   0xe   :  { %155 = vmatprep.subr.mxu0 %v198_v0  ;;  %163 = vmatprep.mubr.msk.f32.mxu0 %vm199_vm0, %v198_v0  ;;  %v41_v3 = vld [vmem:[#allocation4 + $0x10] sm:$0xff]  ;;  %v122_v4 = vld [vmem:[%s243_s2] sm:$0xff]  ;;  %v40_v5 = vld [vmem:[#allocation4 + $0x8] sm:$0xff]  ;;  %vm43_vm1 = vcmask 261120   ;;  %v139_v16 = vstv %s244_s3  ;;  %vm141_vm5 = vcmask 7168  }
   0xf   :  { %172 = vset.pattern.permute.xlu0 %v200_v1  ;;  %156 = vmatpush3.msra.mxu0 %v42_v2  ;;  %v126_v6 = vadd.s32 1, %v122_v4  ;;  %v39_v7 = vld [vmem:[#allocation4] sm:$0xff]  ;;  %v124_v10 = vand.u32 127, %v123_v9 }
  0x10   :  { %157 = vmatprep.subr.mxu0 %v198_v0  ;;  %v38_v8 = vld [vmem:[%s241_s0] sm:$0xff] }
  0x11   :  { %158 = vmatpush3.msra.mxu0 %v41_v3  ;;  %128 = vperm.xlu0 %172, %v126_v6   ;;  %vm125_vm2 = vcmp.eq.s32.totalorder %v124_v10, 0 }
  0x12   :  { %159 = vmatprep.subr.mxu0 %v198_v0 }
  0x13   :  { %160 = vmatpush3.msra.mxu0 %v40_v5 }
  0x14   :  { %161 = vmatprep.subr.mxu0 %v198_v0 }
  0x15   :  { %162 = vmatpush3.msra.mxu0 %v39_v7 }
  0x16   :  { %164 = vmatmul.mubr.msk.f32.vlgmr.msra.gmra.mxu0 %vm43_vm1, %v38_v8 }
  0x8c   :  { %v129_v11 = vpop.permute.xlu0 %128 }
  0x8d   :  { %vm130_vm3 = vcmp.eq.s32.totalorder %v124_v10, %v129_v11 }
  0x8e   :  { %vm131_vm4 = vmor %vm125_vm2, %vm130_vm3 }
  0x8f   :  { %v149_v12 = vsel %vm131_vm4, 1.0, %v198_v0 }
  0xd6   :  { %v113_v13 = vpop.f32.mrf.mxu0 }
  0xd7   :  { %v135_v14 = vmul.f32 %v149_v12, %v113_v13 }
  0xd8   :  { %v165_v15 = vpop.f32.mrf.mxu0 }
  0xd9   :  { %136 = vadd.xlane.f32.xlu0 %v135_v14 }
 0x162   :  { %v137_v17 = vpop.xlane.xlu0 %136 }
 0x163   :  { %v140_v18 = vadd.f32 %v139_v16, %v137_v17 }
 0x165   :  { %142 = vst.msk [vmem:[%s245_s4] sm:$0xff] %vm141_vm5, %v140_v18 }
 0x166   :  { %147 = vsyncpa [#allocation5], 1 }

</bundles_post_ra>
